<compile_context>
chip_gen: v7x
topology: tpu7x:2x2x1
jax: 0.10.0
libtpu: 0.0.40
codegen_flags: <defaults>
</compile_context>

<pallas_src>
import functools

import jax
import jax.numpy as jnp
from jax.experimental import pallas as pl
from jax.experimental.pallas import tpu as pltpu


# --------------------------------------------------------------------------
# Generation-aware VMEM sizing (v5e/v6e: 128 MiB physical, v7x: 64 MiB / TC)
# --------------------------------------------------------------------------
def _vmem_capacity_bytes():
    try:
        cap = getattr(pltpu.get_tpu_info(), "vmem_capacity_bytes", None)
        if cap:
            return int(cap)
    except Exception:
        pass
    return 64 * 1024 * 1024  # conservative default (v7x per-TensorCore)


_VMEM_CAPACITY = _vmem_capacity_bytes()
_VMEM_LIMIT = min(_VMEM_CAPACITY // 2, 64 * 1024 * 1024)  # 64 MiB v5e/v6e, 32 MiB v7x
_BLOCK_BUDGET = _VMEM_LIMIT // 4                          # per-step streamed-block budget


def _pick_lane_tile(n, max_tile):
    """Largest multiple of 128 dividing n and <= max_tile; n itself if n%128 != 0."""
    if n % 128 != 0:
        return n  # full-extent last dim also satisfies the (8,128) rule
    t = min(max_tile, n)
    t = max(128, (t // 128) * 128)
    while n % t != 0:
        t -= 128
    return t


def _pick_ci_tile(ci):
    """Reduction tile over input channels: full extent if small, 8..32-aligned otherwise."""
    if ci <= 8:
        return ci
    for t in (32, 24, 16, 8):
        if ci % t == 0:
            return t
    return ci  # no sublane-aligned divisor -> single reduction step (full extent)


# --------------------------------------------------------------------------
# Pallas kernels
# --------------------------------------------------------------------------
def spectral_mix_kernel(xr_ref, xi_ref, wr_ref, wi_ref, or_ref, oi_ref):
    """Per-frequency complex channel mixing, Ci as a reduction grid axis (P3).

    out[b, o, f] += sum_i x[b, i, f] * w[i, o, f]   (naive 4-mul complex MAC)
    Blocks: xr/xi (1, ci_t, FT), wr/wi (ci_t, Co, FT), or/oi (1, Co, FT).
    Output block index is constant over the reduction axis -> stays resident
    in VMEM and acts as the accumulator.
    """
    k = pl.program_id(2)

    @pl.when(k == 0)
    def _():
        or_ref[...] = jnp.zeros_like(or_ref)
        oi_ref[...] = jnp.zeros_like(oi_ref)

    # Single hoisted broadcast of x across the Co sublane dim (no per-i chains).
    xr = xr_ref[0][:, None, :]      # (ci_t, 1, FT)
    xi = xi_ref[0][:, None, :]
    wr = wr_ref[...]                # (ci_t, Co, FT)
    wi = wi_ref[...]

    # Naive complex product: 4 muls + 2 adds per element (no Karatsuba).
    or_ref[0] += jnp.sum(xr * wr - xi * wi, axis=0)
    oi_ref[0] += jnp.sum(xr * wi + xi * wr, axis=0)


def skip_add_gelu_kernel(x_ref, w_ref, b_ref, xfno_ref, o_ref, *, apply_act):
    """1x1-conv skip path + spectral-path add + bias + (optional) exact GELU.

    Operates directly on an NCHW batch slice with H*W flattened into lanes.
    x: (1, Ci, TN)  w: (Co, Ci)  b: (Co, 1)  xfno: (1, Co, TN)  o: (1, Co, TN)
    """
    x = x_ref[0, :, :]                                                 # (Ci, TN)
    skip = jnp.dot(w_ref[...], x, preferred_element_type=jnp.float32)  # (Co, TN)
    out = skip + b_ref[...] + xfno_ref[0, :, :]
    if apply_act:
        # exact (erf-based) GELU matches torch.nn.functional.gelu default
        out = 0.5 * out * (1.0 + jax.lax.erf(out * 0.7071067811865476))
    o_ref[0, :, :] = out


# --------------------------------------------------------------------------
# FNO block forward (glue in plain JAX, hot paths in Pallas)
# --------------------------------------------------------------------------
def fno_block_forward(x, wsr, wsi, w_skip, b_skip, modes1, modes2, apply_act):
    B, Ci, H, W = x.shape
    Co = w_skip.shape[0]
    Wf = W // 2 + 1
    assert H >= 2 * modes1 and Wf >= modes2

    # ---- Spectral conv: rFFT2 (XLA) -> Pallas channel mix -> irFFT2 (XLA) ----
    # TODO(synk): FFT has no Pallas primitive; rfft2/irfft2 stay in XLA.
    x_ft = jnp.fft.rfft2(x, axes=(-2, -1))                   # (B, Ci, H, Wf) c64
    top = x_ft[:, :, :modes1, :modes2]
    bot = x_ft[:, :, H - modes1 :, :modes2]
    kept = jnp.concatenate([top, bot], axis=2)               # (B, Ci, 2*m1, m2)
    F = 2 * modes1 * modes2
    xr = jnp.real(kept).reshape(B, Ci, F).astype(jnp.float32)
    xi = jnp.imag(kept).reshape(B, Ci, F).astype(jnp.float32)
    wr = wsr.reshape(Ci, Co, F).astype(jnp.float32)
    wi = wsi.reshape(Ci, Co, F).astype(jnp.float32)

    # Lane-dense frequency axis: pad F up to a multiple of 128 (unmasked stores).
    F_pad = ((F + 127) // 128) * 128
    if F_pad != F:
        padf = ((0, 0), (0, 0), (0, F_pad - F))
        xr, xi, wr, wi = (jnp.pad(a, padf) for a in (xr, xi, wr, wi))

    ci_t = _pick_ci_tile(Ci)

    # Per-step VMEM: every streamed block is double-buffered by BlockSpec;
    # include headroom for the (ci_t, Co, FT) product intermediates.
    per_lane = 4 * (2 * (2 * ci_t + 2 * ci_t * Co + 2 * Co) + 2 * ci_t * Co)
    ft_cap = max(128, (_BLOCK_BUDGET // per_lane) // 128 * 128)
    FT = _pick_lane_tile(F_pad, ft_cap)

    or_, oi_ = pl.pallas_call(
        spectral_mix_kernel,
        out_shape=(
            jax.ShapeDtypeStruct((B, Co, F_pad), jnp.float32),
            jax.ShapeDtypeStruct((B, Co, F_pad), jnp.float32),
        ),
        grid_spec=pltpu.PrefetchScalarGridSpec(
            num_scalar_prefetch=0,
            grid=(B, F_pad // FT, Ci // ci_t),                # reduction axis last
            in_specs=[
                pl.BlockSpec((1, ci_t, FT), lambda b, f, k: (b, k, f)),
                pl.BlockSpec((1, ci_t, FT), lambda b, f, k: (b, k, f)),
                pl.BlockSpec((ci_t, Co, FT), lambda b, f, k: (k, 0, f)),
                pl.BlockSpec((ci_t, Co, FT), lambda b, f, k: (k, 0, f)),
            ],
            out_specs=(
                pl.BlockSpec((1, Co, FT), lambda b, f, k: (b, 0, f)),
                pl.BlockSpec((1, Co, FT), lambda b, f, k: (b, 0, f)),
            ),
        ),
        compiler_params=pltpu.CompilerParams(
            dimension_semantics=("parallel", "parallel", "arbitrary"),
            vmem_limit_bytes=_VMEM_LIMIT,
        ),
    )(xr, xi, wr, wi)

    # Rebuild full spectrum: kept region is small vs the full (B,Co,H,Wf) slab,
    # which must be materialized once for irfft2 anyway (XLA fuses concat+pad).
    # TODO(synk): for large mode counts, write kept modes in-place into a
    # pre-zeroed full-spectrum buffer via out_specs + input_output_aliases.
    out_kept = (or_[:, :, :F] + 1j * oi_[:, :, :F]).astype(jnp.complex64)
    out_kept = out_kept.reshape(B, Co, 2 * modes1, modes2)
    mid = jnp.zeros((B, Co, H - 2 * modes1, modes2), jnp.complex64)
    out_ft = jnp.concatenate(
        [out_kept[:, :, :modes1], mid, out_kept[:, :, modes1:]], axis=2
    )                                                         # (B, Co, H, m2)
    out_ft = jnp.pad(out_ft, ((0, 0), (0, 0), (0, 0), (0, Wf - modes2)))
    x_fno = jnp.fft.irfft2(out_ft, s=(H, W), axes=(-2, -1)).astype(jnp.float32)

    # ---- Skip (1x1 conv) + add + GELU, NCHW-direct, tiled over (B, H*W) ----
    # (HBM-bandwidth-bound; bf16 streaming would buy ~1.8x but deviates from
    #  torch f32 numerics, so we keep f32.)
    HW = H * W
    per_lane_skip = 4 * 2 * (Ci + 2 * Co)                     # double-buffered streams
    tn_cap = max(256, min(8192, _BLOCK_BUDGET // per_lane_skip))
    TN = _pick_lane_tile(HW, tn_cap)
    x3 = x.reshape(B, Ci, HW)           # free reshape (contiguous), no transpose
    xfno3 = x_fno.reshape(B, Co, HW)
    bias = b_skip.reshape(Co, 1)

    out3 = pl.pallas_call(
        functools.partial(skip_add_gelu_kernel, apply_act=apply_act),
        out_shape=jax.ShapeDtypeStruct((B, Co, HW), jnp.float32),
        grid_spec=pltpu.PrefetchScalarGridSpec(
            num_scalar_prefetch=0,
            grid=(B, HW // TN),
            in_specs=[
                pl.BlockSpec((1, Ci, TN), lambda b, i: (b, 0, i)),
                pl.BlockSpec((Co, Ci), lambda b, i: (0, 0)),  # grid-invariant -> resident
                pl.BlockSpec((Co, 1), lambda b, i: (0, 0)),   # grid-invariant -> resident
                pl.BlockSpec((1, Co, TN), lambda b, i: (b, 0, i)),
            ],
            out_specs=pl.BlockSpec((1, Co, TN), lambda b, i: (b, 0, i)),
        ),
        compiler_params=pltpu.CompilerParams(
            dimension_semantics=("parallel", "parallel"),
            vmem_limit_bytes=_VMEM_LIMIT,
        ),
    )(x3, w_skip, bias, xfno3)

    return out3.reshape(B, Co, H, W)                          # already NCHW


# --------------------------------------------------------------------------
# Joint module + SubModule (parameters are shared; SubModule picks a layer)
# --------------------------------------------------------------------------
class JointFNOBlocks:
    """Synthetic stand-in for the joint `main_module` holding n_layers of params."""

    def __init__(self, key, in_channels, out_channels, modes1, modes2, n_layers):
        self.n_layers = n_layers
        self.modes1, self.modes2 = modes1, modes2
        k1, k2, k3, k4 = jax.random.split(key, 4)
        scale = 1.0 / (in_channels * out_channels)
        shp = (n_layers, in_channels, out_channels, 2 * modes1, modes2)
        self.w_spec_r = scale * jax.random.normal(k1, shp, jnp.float32)
        self.w_spec_i = scale * jax.random.normal(k2, shp, jnp.float32)
        self.w_skip = jax.random.normal(
            k3, (n_layers, out_channels, in_channels), jnp.float32
        ) / (in_channels ** 0.5)
        self.b_skip = 0.01 * jax.random.normal(k4, (n_layers, out_channels), jnp.float32)

    def forward(self, x, index):
        # `index` is a static Python int (SubModule stores it at construction),
        # so apply_act is a static bool — never evaluated on a tracer.
        apply_act = index < (self.n_layers - 1)   # FNOBlocks: no act on last layer
        return fno_block_forward(
            x,
            self.w_spec_r[index],
            self.w_spec_i[index],
            self.w_skip[index],
            self.b_skip[index],
            self.modes1,
            self.modes2,
            apply_act,
        )


class SubModule:
    """Mirror of the PyTorch SubModule: delegates to the shared main_module."""

    def __init__(self, main_module, indices):
        self.main_module = main_module
        self.indices = indices

    def forward(self, x):
        return self.main_module.forward(x, self.indices)

    __call__ = forward


# --------------------------------------------------------------------------
# Pure-JAX reference for validation
# --------------------------------------------------------------------------
def ref_forward(x, wsr, wsi, w_skip, b_skip, m1, m2, apply_act):
    B, Ci, H, W = x.shape
    Co = w_skip.shape[0]
    x_ft = jnp.fft.rfft2(x, axes=(-2, -1))
    w = (wsr + 1j * wsi).astype(jnp.complex64)                       # (Ci,Co,2m1,m2)
    out_ft = jnp.zeros((B, Co, H, W // 2 + 1), jnp.complex64)
    out_ft = out_ft.at[:, :, :m1, :m2].set(
        jnp.einsum("bixy,ioxy->boxy", x_ft[:, :, :m1, :m2], w[:, :, :m1])
    )
    out_ft = out_ft.at[:, :, H - m1 :, :m2].set(
        jnp.einsum("bixy,ioxy->boxy", x_ft[:, :, H - m1 :, :m2], w[:, :, m1:])
    )
    x_fno = jnp.fft.irfft2(out_ft, s=(H, W), axes=(-2, -1))
    skip = jnp.einsum("oi,bihw->bohw", w_skip, x) + b_skip[None, :, None, None]
    out = x_fno + skip
    if apply_act:
        out = 0.5 * out * (1.0 + jax.lax.erf(out * 0.7071067811865476))
    return out


if __name__ == "__main__":
    key = jax.random.PRNGKey(0)
    B, C, H, W = 2, 4, 16, 16
    modes1 = modes2 = 4
    n_layers = 2

    kx, kp = jax.random.split(key)
    x = jax.random.normal(kx, (B, C, H, W), jnp.float32)

    main = JointFNOBlocks(kp, C, C, modes1, modes2, n_layers)
    sub = SubModule(main, indices=0)

    out = jax.block_until_ready(sub(x))
    assert out.shape == (B, C, H, W)

    ref = ref_forward(
        x, main.w_spec_r[0], main.w_spec_i[0], main.w_skip[0], main.b_skip[0],
        modes1, modes2, apply_act=True,
    )
    err = float(jnp.max(jnp.abs(out - ref)))
    assert err < 1e-3, f"mismatch vs reference: {err}"
    print("KERNEL_OK")
</pallas_src>

<mosaic_0001>
module attributes {stable_mosaic.version = 11 : i64} {
  func.func @spectral_mix_kernel(%arg0: i32, %arg1: i32, %arg2: i32, %arg3: memref<1x4x128xf32, #tpu.memory_space<vmem>>, %arg4: memref<1x4x128xf32, #tpu.memory_space<vmem>>, %arg5: memref<4x4x128xf32, #tpu.memory_space<vmem>>, %arg6: memref<4x4x128xf32, #tpu.memory_space<vmem>>, %arg7: memref<1x4x128xf32, #tpu.memory_space<vmem>>, %arg8: memref<1x4x128xf32, #tpu.memory_space<vmem>>) attributes {dimension_semantics = [#tpu.dimension_semantics<parallel>, #tpu.dimension_semantics<parallel>, #tpu.dimension_semantics<arbitrary>], iteration_bounds = array<i64: 2, 1, 1>, scalar_prefetch = 0 : i64, scratch_operands = 0 : i64, tpu.core_type = #tpu.core_type<tc>, window_params = [{transform_indices = @transform_0, window_bounds = array<i64: 1, 4, 128>}, {transform_indices = @transform_1, window_bounds = array<i64: 1, 4, 128>}, {transform_indices = @transform_2, window_bounds = array<i64: 4, 4, 128>}, {transform_indices = @transform_3, window_bounds = array<i64: 4, 4, 128>}, {transform_indices = @transform_4, window_bounds = array<i64: 1, 4, 128>}, {transform_indices = @transform_5, window_bounds = array<i64: 1, 4, 128>}]} {
    %c0_i32 = arith.constant 0 : i32
    %0 = arith.cmpi eq, %arg2, %c0_i32 : i32
    %1 = arith.extui %0 : i1 to i32
    %c0_i32_0 = arith.constant 0 : i32
    %2 = arith.cmpi ne, %1, %c0_i32_0 : i32
    scf.if %2 {
      %cst_25 = arith.constant 0.000000e+00 : f32
      %35 = vector.broadcast %cst_25 : f32 to vector<1x4x128xf32>
      %c0_26 = arith.constant 0 : index
      %c0_27 = arith.constant 0 : index
      %c0_28 = arith.constant 0 : index
      %36 = vector.load %arg7[%c0_26, %c0_27, %c0_28] : memref<1x4x128xf32, #tpu.memory_space<vmem>>, vector<1x4x128xf32>
      tpu.vector_store %arg7[%c0_26, %c0_27, %c0_28], %35 {strides = array<i32>} : memref<1x4x128xf32, #tpu.memory_space<vmem>>, vector<1x4x128xf32>,
      %cst_29 = arith.constant 0.000000e+00 : f32
      %37 = vector.broadcast %cst_29 : f32 to vector<1x4x128xf32>
      %c0_30 = arith.constant 0 : index
      %c0_31 = arith.constant 0 : index
      %c0_32 = arith.constant 0 : index
      %38 = vector.load %arg8[%c0_30, %c0_31, %c0_32] : memref<1x4x128xf32, #tpu.memory_space<vmem>>, vector<1x4x128xf32>
      tpu.vector_store %arg8[%c0_30, %c0_31, %c0_32], %37 {strides = array<i32>} : memref<1x4x128xf32, #tpu.memory_space<vmem>>, vector<1x4x128xf32>,
    } else {
    }
    %c0 = arith.constant 0 : index
    %c0_1 = arith.constant 0 : index
    %c0_2 = arith.constant 0 : index
    %3 = vector.load %arg3[%c0, %c0_1, %c0_2] : memref<1x4x128xf32, #tpu.memory_space<vmem>>, vector<1x4x128xf32>
    %4 = vector.shape_cast %3 : vector<1x4x128xf32> to vector<4x128xf32>
    %5 = vector.shape_cast %4 : vector<4x128xf32> to vector<4x1x128xf32>
    %c0_3 = arith.constant 0 : index
    %c0_4 = arith.constant 0 : index
    %c0_5 = arith.constant 0 : index
    %6 = vector.load %arg4[%c0_3, %c0_4, %c0_5] : memref<1x4x128xf32, #tpu.memory_space<vmem>>, vector<1x4x128xf32>
    %7 = vector.shape_cast %6 : vector<1x4x128xf32> to vector<4x128xf32>
    %8 = vector.shape_cast %7 : vector<4x128xf32> to vector<4x1x128xf32>
    %c0_6 = arith.constant 0 : index
    %c0_7 = arith.constant 0 : index
    %c0_8 = arith.constant 0 : index
    %9 = vector.load %arg5[%c0_6, %c0_7, %c0_8] : memref<4x4x128xf32, #tpu.memory_space<vmem>>, vector<4x4x128xf32>
    %c0_9 = arith.constant 0 : index
    %c0_10 = arith.constant 0 : index
    %c0_11 = arith.constant 0 : index
    %10 = vector.load %arg6[%c0_9, %c0_10, %c0_11] : memref<4x4x128xf32, #tpu.memory_space<vmem>>, vector<4x4x128xf32>
    %c0_12 = arith.constant 0 : index
    %c0_13 = arith.constant 0 : index
    %c0_14 = arith.constant 0 : index
    %11 = vector.load %arg7[%c0_12, %c0_13, %c0_14] : memref<1x4x128xf32, #tpu.memory_space<vmem>>, vector<1x4x128xf32>
    %12 = vector.shape_cast %11 : vector<1x4x128xf32> to vector<4x128xf32>
    %13 = vector.broadcast %5 : vector<4x1x128xf32> to vector<4x4x128xf32>
    %14 = arith.mulf %13, %9 : vector<4x4x128xf32>
    %15 = vector.broadcast %8 : vector<4x1x128xf32> to vector<4x4x128xf32>
    %16 = arith.mulf %15, %10 : vector<4x4x128xf32>
    %17 = arith.subf %14, %16 : vector<4x4x128xf32>
    %cst = arith.constant dense<0.000000e+00> : vector<4x128xf32>
    %18 = vector.multi_reduction <add>, %17, %cst [0] : vector<4x4x128xf32> to vector<4x128xf32>
    %19 = arith.addf %12, %18 : vector<4x128xf32>
    %c0_15 = arith.constant 0 : index
    %c0_16 = arith.constant 0 : index
    %c0_17 = arith.constant 0 : index
    %20 = vector.load %arg7[%c0_15, %c0_16, %c0_17] : memref<1x4x128xf32, #tpu.memory_space<vmem>>, vector<1x4x128xf32>
    %21 = vector.shape_cast %20 : vector<1x4x128xf32> to vector<4x128xf32>
    %22 = vector.shape_cast %19 : vector<4x128xf32> to vector<1x4x128xf32>
    tpu.vector_store %arg7[%c0_15, %c0_16, %c0_17], %22 {strides = array<i32>} : memref<1x4x128xf32, #tpu.memory_space<vmem>>, vector<1x4x128xf32>,
    %c0_18 = arith.constant 0 : index
    %c0_19 = arith.constant 0 : index
    %c0_20 = arith.constant 0 : index
    %23 = vector.load %arg8[%c0_18, %c0_19, %c0_20] : memref<1x4x128xf32, #tpu.memory_space<vmem>>, vector<1x4x128xf32>
    %24 = vector.shape_cast %23 : vector<1x4x128xf32> to vector<4x128xf32>
    %25 = vector.broadcast %5 : vector<4x1x128xf32> to vector<4x4x128xf32>
    %26 = arith.mulf %25, %10 : vector<4x4x128xf32>
    %27 = vector.broadcast %8 : vector<4x1x128xf32> to vector<4x4x128xf32>
    %28 = arith.mulf %27, %9 : vector<4x4x128xf32>
    %29 = arith.addf %26, %28 : vector<4x4x128xf32>
    %cst_21 = arith.constant dense<0.000000e+00> : vector<4x128xf32>
    %30 = vector.multi_reduction <add>, %29, %cst_21 [0] : vector<4x4x128xf32> to vector<4x128xf32>
    %31 = arith.addf %24, %30 : vector<4x128xf32>
    %c0_22 = arith.constant 0 : index
    %c0_23 = arith.constant 0 : index
    %c0_24 = arith.constant 0 : index
    %32 = vector.load %arg8[%c0_22, %c0_23, %c0_24] : memref<1x4x128xf32, #tpu.memory_space<vmem>>, vector<1x4x128xf32>
    %33 = vector.shape_cast %32 : vector<1x4x128xf32> to vector<4x128xf32>
    %34 = vector.shape_cast %31 : vector<4x128xf32> to vector<1x4x128xf32>
    tpu.vector_store %arg8[%c0_22, %c0_23, %c0_24], %34 {strides = array<i32>} : memref<1x4x128xf32, #tpu.memory_space<vmem>>, vector<1x4x128xf32>,
    return
  }
  func.func @transform_0(%arg0: i32, %arg1: i32, %arg2: i32) -> (i32, i32, i32) {
    %c0_i32 = arith.constant 0 : i32
    return %arg0, %arg2, %arg1 : i32, i32, i32
  }
  func.func @transform_1(%arg0: i32, %arg1: i32, %arg2: i32) -> (i32, i32, i32) {
    %c0_i32 = arith.constant 0 : i32
    return %arg0, %arg2, %arg1 : i32, i32, i32
  }
  func.func @transform_2(%arg0: i32, %arg1: i32, %arg2: i32) -> (i32, i32, i32) {
    %c0_i32 = arith.constant 0 : i32
    %c0_i32_0 = arith.constant 0 : i32
    return %arg2, %c0_i32, %arg1 : i32, i32, i32
  }
  func.func @transform_3(%arg0: i32, %arg1: i32, %arg2: i32) -> (i32, i32, i32) {
    %c0_i32 = arith.constant 0 : i32
    %c0_i32_0 = arith.constant 0 : i32
    return %arg2, %c0_i32, %arg1 : i32, i32, i32
  }
  func.func @transform_4(%arg0: i32, %arg1: i32, %arg2: i32) -> (i32, i32, i32) {
    %c0_i32 = arith.constant 0 : i32
    %c0_i32_0 = arith.constant 0 : i32
    return %arg0, %c0_i32, %arg1 : i32, i32, i32
  }
  func.func @transform_5(%arg0: i32, %arg1: i32, %arg2: i32) -> (i32, i32, i32) {
    %c0_i32 = arith.constant 0 : i32
    %c0_i32_0 = arith.constant 0 : i32
    return %arg0, %c0_i32, %arg1 : i32, i32, i32
  }
}

</mosaic_0001>

<bundles_post_ra>
// kernel: tpu_custom_call.1
= control target key start
LH: loop header
LB: loop body
LE: loop exit
PB: predicated region body
PF: predicated region fallthrough
CT: control target
= control target key end

     0   :  { %s1475_s0 = inlined_call_operand.hbm [shape: f32[2,4,128], index: 0, kind: input, shape index: {}]   ;;  %s1476_s1 = inlined_call_operand.hbm [shape: f32[2,4,128], index: 1, kind: input, shape index: {}]   ;;  %s1477_s2 = inlined_call_operand.hbm [shape: f32[4,4,128], index: 2, kind: input, shape index: {}]   ;;  %s1478_s3 = inlined_call_operand.hbm [shape: f32[4,4,128], index: 3, kind: input, shape index: {}]   ;;  %s1479_s4 = inlined_call_operand.hbm [shape: f32[2,4,128], index: 4, kind: output, shape index: {0}]   ;;  %s1480_s5 = inlined_call_operand.hbm [shape: f32[2,4,128], index: 5, kind: output, shape index: {1}]  }
   0x1   :  { %1487 = sst [smem:[#allocation21_spill]] %s1477_s2 }
   0x2   :  { %1488 = sst [smem:[#allocation22_spill]] %s1478_s3 }
   0x3   :  { %11 = vsyncpa [#allocation3], 0 }
   0x4   :  { %13 = vsyncpa [#allocation3 + $0x1], 0 }
   0x5   :  { %14 = vsyncpa [#allocation6], 0 }
   0x6   :  { %16 = vsyncpa [#allocation6 + $0x1], 0 }
   0x7   :  { %17 = vsyncpa [#allocation9], 0 }
   0x8   :  { %18 = vsyncpa [#allocation4], 0 }
   0x9   :  { %20 = vsyncpa [#allocation4 + $0x1], 0 }
   0xa   :  { %21 = vsyncpa [#allocation12], 0 }
   0xb   :  { %23 = vsyncpa [#allocation12 + $0x1], 0  ;;  %s1136_s18 = smov 0   ;;  %s1138_s19 = smov 0  }
   0xc   :  { %s1140_s20 = smov 0   ;;  %s1142_s21 = smov 0  }
   0xd   :  { %s1144_s22 = smov 0   ;;  %s1146_s23 = smov 0  }
   0xe LB: > { %1489 = sst [smem:[#allocation19_spill]] %s1090_s22  ;;  %s1167_s24 = sadd.s32 4294967295, %s1094_s23   ;;  %s1094_s23 = sphi %s1146_s23, %s29_s23   ;;  %s1090_s22 = sphi %s1144_s22, %s1510_s22   ;;  %s1086_s21 = sphi %s1142_s21, %s1509_s21   ;;  %s1082_s20 = sphi %s1140_s20, %s1513_s20   ;;  %s1078_s19 = sphi %s1138_s19, %s1512_s19   ;;  %s1074_s18 = sphi %s1136_s18, %s1511_s18  }
   0xf   : > { %s731_s25 = sadd.s32 4294967294, %s1094_s23   ;;  %p72_p0 = scmp.ne.s32.totalorder %s1078_s19, %s1074_s18 }
  0x10   : > { %p1481_p1 = scmp.eq.s32.totalorder %s1167_s24, 0  ;;  %p190_p3 = scmp.eq.s32.totalorder %s731_s25, 1 }
  0x11   : > { %p732_p5 = scmp.ge.s32.totalorder %s1094_s23, 1  ;;  %p225_p7 = scmp.lt.s32.totalorder %s1094_s23, 3 }
  0x12   : > { %p1176_p4 = por %p1481_p1, %p72_p0  ;;  %p1181_p6 = por %p190_p3, %p72_p0 }
  0x13   : > { %p1186_p8 = pnand %p732_p5, %p225_p7  ;;  %s1096_s29 = smov [#allocation7]  }
  0x14   : > { %s1490_s26 = scalar_select %p1176_p4, 1, 0 }
  0x15   : > { %s1491_s27 = scalar_select %p1181_p6, 1, 0 }
  0x16   : > { %s1492_s28 = scalar_select %p1186_p8, 1, 0 }
  0x17   : > { %s241_s30 = sshll.u32 %s1096_s29, 4  ;;  %p771_p9 = pneg %p1186_p8  ;;  %s1190_s30 = int_to_ptr.vmem [resolvable:$true] %s241_s30 }
  0x18   : > { %s1097_s7 = smov [#allocation8]   ;;  %s1494_s2 = sld [smem:[#allocation21_spill]] }
  0x19   : > { %p1197_p11 = pnand %p771_p9, %p1481_p1  ;;  %s258_s8 = sshll.u32 %s1097_s7, 4  ;;  %s1201_s8 = int_to_ptr.vmem [resolvable:$true] %s258_s8 }
  0x1b   : > { %p854_p13 = pneg %p1197_p11 }
  0x1e   : > { %s852_s11 = scalar_lea.hbm %s1494_s2, 256 }
  0x1f   : > { %p853_p12 = scmp.ne.s32.totalorder %s1494_s2, %s852_s11  ;;  %p859_p5 = scmp.lt.u32.totalorder %s852_s11, %s1494_s2 }
  0x21   : > { %p855_p0 = pnand %p854_p13, %p853_p12 }
  0x23   : > { %p856_p3 = pneg %p855_p0 }
  0x25   : > { %p861_p7 = pnand %p859_p5, %p856_p3 }
  0x27   : > { %864 = shalt.err (!%p861_p7)
}
  0x28   : > { %s865_s16 = scalar_lea.vmem %s1190_s30, 256  ;;  %p873_p2 = scmp.lt.s32.totalorder %s1190_s30, %s1190_s30 }
  0x29   : > { %p866_p9 = scmp.ne.s32.totalorder %s1190_s30, %s865_s16  ;;  %p874_p12 = scmp.lt.s32.totalorder %s865_s16, %s865_s16 }
  0x2b   : > { %p868_p10 = pnand %p866_p9, %p854_p13  ;;  %p875_p0 = por %p874_p12, %p873_p2 }
  0x2d   : > { %p869_p1 = pneg %p868_p10 }
  0x2f   : > { %p876_p6 = pnand %p875_p0, %p869_p1 }
  0x31   : > { %879 = shalt.err (!%p876_p6)
}
  0x32   : > { %s1098_s17 = smov 64   ;;  %s1099_s25 = smov 4  }
  0x33   : > { %774 = dma.hbm_to_vmem [thread:$0]  (!%p1197_p11), %s1494_s2, 256, %s1190_s30, [#allocation6], %s1098_s17, %s1098_s17, %s1099_s25  }
  0x34   : > { %s1495_s3 = sld [smem:[#allocation22_spill]] }
  0x3a   : > { %s880_s11 = scalar_lea.hbm %s1495_s3, 256 }
  0x3b   : > { %p881_p2 = scmp.ne.s32.totalorder %s1495_s3, %s880_s11  ;;  %p887_p10 = scmp.lt.u32.totalorder %s880_s11, %s1495_s3 }
  0x3d   : > { %p883_p1 = pnand %p881_p2, %p854_p13 }
  0x3f   : > { %p884_p6 = pneg %p883_p1 }
  0x41   : > { %p889_p3 = pnand %p887_p10, %p884_p6 }
  0x43   : > { %892 = shalt.err (!%p889_p3)
}
  0x44   : > { %s893_s30 = scalar_lea.vmem %s1201_s8, 256  ;;  %p901_p12 = scmp.lt.s32.totalorder %s1201_s8, %s1201_s8 }
  0x45   : > { %p894_p5 = scmp.ne.s32.totalorder %s1201_s8, %s893_s30  ;;  %p902_p0 = scmp.lt.s32.totalorder %s893_s30, %s893_s30 }
  0x47   : > { %p896_p7 = pnand %p894_p5, %p854_p13  ;;  %p903_p2 = por %p902_p0, %p901_p12 }
  0x49   : > { %p897_p9 = pneg %p896_p7 }
  0x4b   : > { %p904_p1 = pnand %p903_p2, %p897_p9 }
  0x4d   : > { %907 = shalt.err (!%p904_p1)
}
  0x4e   : > { %777 = dma.hbm_to_vmem [thread:$0]  (!%p1197_p11), %s1495_s3, 256, %s1201_s8, [#allocation9], %s1098_s17, %s1098_s17, %s1099_s25  }
  0x4f   : > { %s48_s7 = sadd.s32 1, %s1090_s22  ;;  %s59_s9 = sadd.s32 1, %s1082_s20 }
  0x50   : > { %p50_p13 = scmp.ge.s32.totalorder %s48_s7, 2  ;;  %p66_p6 = scmp.ne.s32.totalorder %s1082_s20, %s1078_s19 }
  0x51   : > { %p67_p10 = scmp.eq.s32.totalorder %s1094_s23, 0  ;;  %p794_p3 = scmp.lt.s32.totalorder %s1094_s23, 2 }
  0x52   : > { %s1515_s7 = smov (%p50_p13, %s48_s7), 0  ;;  %p1497_p7 = scmp.eq.s32.totalorder %s1167_s24, 1 }
  0x53   : > { %1496 = sst [smem:[#allocation20_spill]] %s1515_s7  ;;  %p68_p5 = por %p67_p10, %p66_p6 }
  0x54   : > { %p1265_p9 = por %p1497_p7, %p66_p6  ;;  %s52_s10 = ssub.s32 %s1090_s22, %s1515_s7 }
  0x55   : > { %s272_s11 = sand.u32 1, %s1082_s20   ;;  %p57_p12 = scmp.eq.s32.totalorder %s52_s10, 0 }
  0x56   : > { %s1498_s6 = scalar_select %p1265_p9, 1, 0 }
  0x57   : > { %s1272_s8 = sshll.u32 %s272_s11, 2  ;;  %s737_s17 = sshll.u32 %s1090_s22, 6 }
  0x58   : > { %s1276_s25 = scalar_select %p57_p12, %s1082_s20, %s59_s9  }
  0x59   : > { %s1281_s14 = scalar_lea.hbm %s1475_s0, %s737_s17  ;;  %s276_s15 = scalar_lea.vmem [#allocation2], %s1272_s8 }
  0x5a   : > { %s285_s30 = sshll.u32 %s276_s15, 4  ;;  %p1286_p11 = pnand %p794_p3, %p68_p5  ;;  %s1290_s30 = int_to_ptr.vmem [resolvable:$true] %s285_s30 }
  0x5b   : > { %s1295_s10 = scalar_lea.hbm %s1476_s1, %s737_s17  ;;  %s273_s12 = scalar_lea.sflag [#allocation3], %s272_s11 }
  0x5c   : > { %s908_s13 = scalar_lea.hbm %s1281_s14, 64  ;;  %p910_p2 = pneg %p1286_p11 }
  0x5d   : > { %p909_p0 = scmp.ne.s32.totalorder %s1281_s14, %s908_s13  ;;  %s913_s3 = scalar_lea.hbm %s1475_s0, 128 }
  0x5e   : > { %p914_p6 = scmp.lt.u32.totalorder %s1281_s14, %s1475_s0  ;;  %p915_p10 = scmp.lt.u32.totalorder %s913_s3, %s908_s13 }
  0x5f   : > { %p911_p1 = pnand %p910_p2, %p909_p0  ;;  %p917_p5 = scmp.lt.u32.totalorder %s908_s13, %s1281_s14 }
  0x60   : > { %p916_p3 = por %p915_p10, %p914_p6 }
  0x61   : > { %p912_p13 = pneg %p911_p1 }
  0x62   : > { %p918_p7 = por %p917_p5, %p916_p3 }
  0x64   : > { %p919_p12 = pnand %p918_p7, %p912_p13 }
  0x66   : > { %922 = shalt.err (!%p919_p12)
}
  0x67   : > { %s923_s11 = scalar_lea.vmem %s1290_s30, 64  ;;  %s1100_s2 = smov [#allocation2]  }
  0x68   : > { %p924_p0 = scmp.ne.s32.totalorder %s1290_s30, %s923_s11  ;;  %s928_s17 = sshll.u32 %s1100_s2, 4  ;;  %s929_s17 = int_to_ptr.vmem [resolvable:$false] %s928_s17 }
  0x69   : > { %s930_s22 = scalar_lea.vmem %s929_s17, 128  ;;  %p931_p4 = scmp.lt.s32.totalorder %s1290_s30, %s929_s17 }
  0x6a   : > { %p926_p1 = pnand %p924_p0, %p910_p2  ;;  %p932_p6 = scmp.lt.s32.totalorder %s930_s22, %s923_s11 }
  0x6c   : > { %p927_p9 = pneg %p926_p1  ;;  %p933_p10 = por %p932_p6, %p931_p4 }
  0x6e   : > { %p934_p3 = pnand %p933_p10, %p927_p9 }
  0x70   : > { %937 = shalt.err (!%p934_p3)
}
  0x71   : > { %781 = dma.hbm_to_vmem [thread:$0]  (!%p1286_p11), %s1281_s14, 64, %s1290_s30, %s273_s12  }
  0x72   : > { %s292_s3 = sand.u32 1, %s1094_s23   ;;  %s296_s7 = scalar_lea.vmem [#allocation5], %s1272_s8 }
  0x73   : > { %s305_s29 = sshll.u32 %s296_s7, 4  ;;  %s293_s9 = scalar_lea.sflag [#allocation6], %s292_s3  ;;  %s306_s29 = int_to_ptr.vmem [resolvable:$true] %s305_s29 }
  0x74   : > { %s938_s13 = scalar_lea.hbm %s1295_s10, 64  ;;  %s943_s2 = scalar_lea.hbm %s1476_s1, 128 }
  0x75   : > { %p939_p4 = scmp.ne.s32.totalorder %s1295_s10, %s938_s13  ;;  %p944_p5 = scmp.lt.u32.totalorder %s1295_s10, %s1476_s1 }
  0x76   : > { %p945_p7 = scmp.lt.u32.totalorder %s943_s2, %s938_s13  ;;  %p947_p0 = scmp.lt.u32.totalorder %s938_s13, %s1295_s10 }
  0x77   : > { %p941_p9 = pnand %p939_p4, %p910_p2 }
  0x78   : > { %p946_p12 = por %p945_p7, %p944_p5 }
  0x79   : > { %p942_p13 = pneg %p941_p9 }
  0x7a   : > { %p948_p1 = por %p947_p0, %p946_p12 }
  0x7c   : > { %p949_p6 = pnand %p948_p1, %p942_p13 }
  0x7e   : > { %952 = shalt.err (!%p949_p6)
}
  0x7f   : > { %s953_s8 = scalar_lea.vmem %s306_s29, 64  ;;  %s1101_s14 = smov [#allocation5]  }
  0x80   : > { %p954_p10 = scmp.ne.s32.totalorder %s306_s29, %s953_s8  ;;  %s958_s30 = sshll.u32 %s1101_s14, 4  ;;  %s959_s30 = int_to_ptr.vmem [resolvable:$false] %s958_s30 }
  0x81   : > { %s960_s12 = scalar_lea.vmem %s959_s30, 128  ;;  %p961_p9 = scmp.lt.s32.totalorder %s306_s29, %s959_s30 }
  0x82   : > { %p956_p3 = pnand %p954_p10, %p910_p2  ;;  %p962_p8 = scmp.lt.s32.totalorder %s960_s12, %s953_s8 }
  0x84   : > { %p957_p4 = pneg %p956_p3  ;;  %p963_p5 = por %p962_p8, %p961_p9 }
  0x86   : > { %p964_p7 = pnand %p963_p5, %p957_p4 }
  0x88   : > { %967 = shalt.err (!%p964_p7)
}
  0x89   : > { %784 = dma.hbm_to_vmem [thread:$0]  (!%p1286_p11), %s1295_s10, 64, %s306_s29, %s293_s9  }
  0x8a   : > { %p1500_p13 = scmp.ne.s32.totalorder %s1492_s28, 0 }
  0x8b   : > { %s1346_s3 = sand.u32 (!%p1500_p13), 1, %s1078_s19   ;;  %p1501_p8 = scmp.ne.s32.totalorder (!%p1500_p13), %s1490_s26, 0 }
  0x8c   : > { %314 = sbr.rel (%p1500_p13) target bundleno = 223 (0xdf), region = 36  ;;  %s1349_s7 = sshll.u32 (!%p1500_p13), %s1346_s3, 2 }
  0x8d   : > { %s317_s13 = scalar_lea.sflag (!%p1500_p13), [#allocation3], %s1346_s3  ;;  %s320_s15 = scalar_lea.vmem (!%p1500_p13), [#allocation2], %s1349_s7 }
  0x93   : > { %1049 = dma.done.wait (%p1501_p8), %s317_s13, 64  }
  0x94   : > { %1051 = vsyncadd (%p1501_p8), %s317_s13, 4294967232  ;;  %s325_s28 = sand.u32 1, %s1167_s24   ;;  %s329_s10 = scalar_lea.vmem [#allocation5], %s1349_s7 }
  0x95   : > { %s326_s16 = scalar_lea.sflag [#allocation6], %s325_s28 }
  0x96   : > { %1053 = dma.done.wait (%p1501_p8), %s326_s16, 64  }
  0x97   : > { %1055 = vsyncadd (%p1501_p8), %s326_s16, 4294967232  ;;  %p1502_p11 = scmp.eq.s32.totalorder %s1167_s24, 0 }
  0x99   : > { %1057 = dma.done.wait (%p1502_p11), [#allocation6], 256   ;;  %p1503_p2 = pmov %p1502_p11 }
  0x9b   : > { %1059 = vsyncadd (%p1503_p2), [#allocation6], 4294967040  ;;  %p1504_p12 = pmov %p1503_p2 }
  0x9c   : > { %p1505_p0 = pmov %p1503_p2 }
  0x9d   : > { %1061 = dma.done.wait (%p1504_p12), [#allocation9], 256  }
  0x9e   : > { %1063 = vsyncadd (%p1505_p0), [#allocation9], 4294967040  ;;  %v395_v0 = vlaneseq  ;;  %s1372_s29 = scalar_lea.vmem [#allocation10], %s1349_s7  ;;  %v1102_v1 = vmov 0.0   ;;  %s1376_s26 = scalar_lea.vmem [#allocation11], %s1349_s7  ;;  %vm495_vm0 = vcmask 1043456  }
  0x9f   : > { %380 = vst [vmem:[%s1372_s29] sm:$0xf] %v1102_v1  ;;  %381 = vst [vmem:[%s1376_s26] sm:$0xf] %v1102_v1  ;;  %v1103_v2 = vmov 1966171168   ;;  %v434_v14 = vld [vmem:[#allocation7] sm:$0xf] }
  0xa0   : > { %v393_v3 = vunpack.c.l.s4 %v1103_v2  ;;  %v396_v4 = vshrl.u32 %v395_v0, 7  ;;  %v747_v8 = vld.sshfl [vmem:[%s320_s15] sm:$0x33 pattern:$0x75316420]  ;;  %s751_s24 = sshll.u32 %s1086_s21, 6 }
  0xa1   : > { %v391_v9 = vcombine.high %v747_v8, %v747_v8  ;;  %v748_v11 = vld.sshfl [vmem:[%s329_s10] sm:$0x33 pattern:$0x75316420]  ;;  %v438_v17 = vld [vmem:[#allocation8] sm:$0xf]  ;;  %s1395_s22 = scalar_lea.hbm %s1479_s4, %s751_s24  ;;  %s1403_s14 = scalar_lea.hbm %s1480_s5, %s751_s24 }
  0xa2   : > { %v394_v5 = vunpack.c.0.s8 %v393_v3  ;;  %v445_v7 = vsub.s32 0, %v396_v4  ;;  %v417_v12 = vcombine.high %v748_v11, %v748_v11  ;;  %v435_v21 = vld [vmem:[#allocation7 + $0x4] sm:$0xf]  ;;  %v436_v22 = vld [vmem:[#allocation7 + $0x8] sm:$0xf]  ;;  %s547_s9 = sshll.u32 %s1372_s29, 4  ;;  %s1397_s9 = int_to_ptr.vmem [resolvable:$true] %s547_s9 }
  0xa3   : > { %v439_v25 = vld [vmem:[#allocation8 + $0x4] sm:$0xf]  ;;  %v440_v26 = vld [vmem:[#allocation8 + $0x8] sm:$0xf]  ;;  %v437_v31 = vld [vmem:[#allocation7 + $0xc] sm:$0xf] }
  0xa4   : > { %v397_v6 = vsub.s32 %v394_v5, %v396_v4  ;;  %v441_v32 = vld [vmem:[#allocation8 + $0xc] sm:$0xf]  ;;  %s561_s11 = sshll.u32 %s1376_s26, 4  ;;  %s528_s30 = scalar_lea.sflag [#allocation4], %s1346_s3  ;;  %s1405_s11 = int_to_ptr.vmem [resolvable:$true] %s561_s11 }
  0xa5   : > { %s968_s12 = scalar_lea.vmem %s1397_s9, 64  ;;  %p1506_p6 = scmp.ne.s32.totalorder %s1498_s6, 0 }
  0xa6   : > { %v398_v10 = vrot.slane %v747_v8, %v397_v6  ;;  %v424_v13 = vrot.slane %v748_v11, %v397_v6  ;;  %v405_v15 = vrot.slane %v391_v9, %v397_v6  ;;  %v431_v19 = vrot.slane %v417_v12, %v397_v6  ;;  %v442_v5 = vld [vmem:[%s1372_s29] sm:$0xf]  ;;  %v505_v11 = vld [vmem:[%s1376_s26] sm:$0xf]  ;;  %p969_p1 = scmp.ne.s32.totalorder %s1397_s9, %s968_s12  ;;  %s1104_s7 = smov [#allocation10]  }
  0xa7   : > { %s972_s13 = sshll.u32 %s1104_s7, 4  ;;  %s973_s13 = int_to_ptr.vmem [resolvable:$false] %s972_s13 }
  0xa8   : > { %v406_v16 = vcombine.high %v398_v10, %v398_v10  ;;  %v446_v18 = vrot.slane %v398_v10, %v445_v7  ;;  %v432_v20 = vcombine.high %v424_v13, %v424_v13  ;;  %v470_v23 = vrot.slane %v424_v13, %v445_v7  ;;  %p970_p10 = pnand %p969_p1, %p1506_p6  ;;  %s974_s15 = scalar_lea.vmem %s973_s13, 128 }
  0xa9   : > { %v407_v24 = vcombine.high %v405_v15, %v405_v15  ;;  %v450_v27 = vrot.slane %v405_v15, %v445_v7  ;;  %v433_v30 = vcombine.high %v431_v19, %v431_v19  ;;  %v474_v33 = vrot.slane %v431_v19, %v445_v7  ;;  %p975_p4 = scmp.lt.s32.totalorder %s1397_s9, %s973_s13  ;;  %p976_p9 = scmp.lt.s32.totalorder %s974_s15, %s968_s12 }
  0xaa   : > { %v454_v28 = vrot.slane %v406_v16, %v445_v7  ;;  %v463_v29 = vmul.f32 %v446_v18, %v434_v14  ;;  %v478_v34 = vrot.slane %v432_v20, %v445_v7  ;;  %v487_v35 = vmul.f32 %v470_v23, %v438_v17  ;;  %p971_p3 = pneg %p970_p10 }
  0xab   : > { %v458_v36 = vrot.slane %v407_v24, %v445_v7  ;;  %v464_v37 = vmul.f32 %v450_v27, %v435_v21  ;;  %v506_v39 = vmul.f32 %v446_v18, %v438_v17  ;;  %v482_v40 = vrot.slane %v433_v30, %v445_v7  ;;  %p977_p5 = por %p976_p9, %p975_p4 }
  0xac   : > { %v465_v38 = vmul.f32 %v454_v28, %v436_v22  ;;  %v488_v41 = vmul.f32 %v474_v33, %v439_v25  ;;  %v489_v42 = vmul.f32 %v478_v34, %v440_v26  ;;  %v491_v43 = vsub.f32 %v463_v29, %v487_v35 }
  0xad   : > { %v466_v44 = vmul.f32 %v458_v36, %v437_v31  ;;  %v507_v45 = vmul.f32 %v450_v27, %v439_v25  ;;  %v508_v46 = vmul.f32 %v454_v28, %v440_v26  ;;  %v509_v47 = vmul.f32 %v458_v36, %v441_v32  ;;  %p978_p7 = pnand %p977_p5, %p971_p3 }
  0xae   : > { %v490_v48 = vmul.f32 %v482_v40, %v441_v32  ;;  %v492_v49 = vsub.f32 %v464_v37, %v488_v41  ;;  %v493_v50 = vsub.f32 %v465_v38, %v489_v42  ;;  %v496_v51 = vsel %vm495_vm0, %v491_v43, 0.0 }
  0xaf   : > { %v510_v52 = vmul.f32 %v470_v23, %v434_v14  ;;  %v511_v53 = vmul.f32 %v474_v33, %v435_v21  ;;  %v512_v54 = vmul.f32 %v478_v34, %v436_v22  ;;  %v513_v55 = vmul.f32 %v482_v40, %v437_v31 }
  0xb0   : > { %v494_v56 = vsub.f32 %v466_v44, %v490_v48  ;;  %v497_v57 = vsel %vm495_vm0, %v492_v49, 0.0  ;;  %v499_v58 = vsel %vm495_vm0, %v493_v50, 0.0 }
  0xb1   : > { %v498_v59 = vadd.f32 %v497_v57, %v496_v51  ;;  %v514_v60 = vadd.f32 %v510_v52, %v506_v39  ;;  %v515_v61 = vadd.f32 %v511_v53, %v507_v45  ;;  %v516_v62 = vadd.f32 %v512_v54, %v508_v46 }
  0xb2   : > { %v501_v63 = vsel %vm495_vm0, %v494_v56, 0.0  ;;  %v517_v0 = vadd.f32 %v513_v55, %v509_v47 }
  0xb3   : > { %v500_v1 = vadd.f32 %v499_v58, %v498_v59  ;;  %v518_v2 = vsel %vm495_vm0, %v514_v60, 0.0  ;;  %v519_v3 = vsel %vm495_vm0, %v515_v61, 0.0  ;;  %v521_v4 = vsel %vm495_vm0, %v516_v62, 0.0 }
  0xb4   : > { %v520_v6 = vadd.f32 %v519_v3, %v518_v2  ;;  %v523_v8 = vsel %vm495_vm0, %v517_v0, 0.0 }
  0xb5   : > { %v502_v7 = vadd.f32 %v501_v63, %v500_v1 }
  0xb6   : > { %v522_v9 = vadd.f32 %v521_v4, %v520_v6 }
  0xb7   : > { %v503_v10 = vadd.f32 %v502_v7, %v442_v5 }
  0xb8   : > { %v524_v12 = vadd.f32 %v523_v8, %v522_v9 }
  0xb9   : > { %504 = vst [vmem:[%s1372_s29] sm:$0xf] %v503_v10 }
  0xba   : > { %v525_v13 = vadd.f32 %v524_v12, %v505_v11 }
  0xbb   : > { %981 = shalt.err (!%p978_p7)
}
  0xbc   : > { %s982_s28 = scalar_lea.hbm %s1395_s22, 64  ;;  %s986_s29 = scalar_lea.hbm %s1479_s4, 128 }
  0xbd   : > { %p983_p13 = scmp.ne.s32.totalorder %s1395_s22, %s982_s28  ;;  %p987_p2 = scmp.lt.u32.totalorder %s1395_s22, %s1479_s4 }
  0xbe   : > { %p988_p12 = scmp.lt.u32.totalorder %s986_s29, %s982_s28  ;;  %p990_p1 = scmp.lt.u32.totalorder %s982_s28, %s1395_s22 }
  0xbf   : > { %p984_p8 = pnand %p983_p13, %p1506_p6 }
  0xc0   : > { %p989_p0 = por %p988_p12, %p987_p2 }
  0xc1   : > { %p985_p11 = pneg %p984_p8 }
  0xc2   : > { %p991_p10 = por %p990_p1, %p989_p0 }
  0xc4   : > { %p992_p3 = pnand %p991_p10, %p985_p11 }
  0xc6   : > { %995 = shalt.err (!%p992_p3)
}
  0xc7   : > { %767 = dma.vmem_to_hbm [thread:$0]  (%p1506_p6), %s1397_s9, 64, %s1395_s22, %s528_s30   ;;  %526 = vst [vmem:[%s1376_s26] sm:$0xf] %v525_v13 }
  0xc8   : > { %s533_s17 = scalar_lea.sflag [#allocation12], %s1346_s3  ;;  %s996_s21 = scalar_lea.vmem %s1405_s11, 64 }
  0xc9   : > { %p997_p4 = scmp.ne.s32.totalorder %s1405_s11, %s996_s21  ;;  %s1105_s8 = smov [#allocation11]  }
  0xca   : > { %s1000_s12 = sshll.u32 %s1105_s8, 4  ;;  %s1001_s12 = int_to_ptr.vmem [resolvable:$false] %s1000_s12 }
  0xcb   : > { %p998_p9 = pnand %p997_p4, %p1506_p6  ;;  %s1002_s7 = scalar_lea.vmem %s1001_s12, 128 }
  0xcc   : > { %p1003_p7 = scmp.lt.s32.totalorder %s1405_s11, %s1001_s12  ;;  %p1004_p13 = scmp.lt.s32.totalorder %s1002_s7, %s996_s21 }
  0xcd   : > { %p999_p5 = pneg %p998_p9 }
  0xce   : > { %p1005_p8 = por %p1004_p13, %p1003_p7 }
  0xd0   : > { %p1006_p11 = pnand %p1005_p8, %p999_p5 }
  0xd2   : > { %1009 = shalt.err (!%p1006_p11)
}
  0xd3   : > { %s1010_s3 = scalar_lea.hbm %s1403_s14, 64  ;;  %s1014_s22 = scalar_lea.hbm %s1480_s5, 128 }
  0xd4   : > { %p1011_p2 = scmp.ne.s32.totalorder %s1403_s14, %s1010_s3  ;;  %p1015_p1 = scmp.lt.u32.totalorder %s1403_s14, %s1480_s5 }
  0xd5   : > { %p1016_p10 = scmp.lt.u32.totalorder %s1014_s22, %s1010_s3  ;;  %p1018_p4 = scmp.lt.u32.totalorder %s1010_s3, %s1403_s14 }
  0xd6   : > { %p1012_p12 = pnand %p1011_p2, %p1506_p6 }
  0xd7   : > { %p1017_p3 = por %p1016_p10, %p1015_p1 }
  0xd8   : > { %p1013_p0 = pneg %p1012_p12 }
  0xd9   : > { %p1019_p9 = por %p1018_p4, %p1017_p3 }
  0xdb   : > { %p1020_p5 = pnand %p1019_p9, %p1013_p0 }
  0xdd   : > { %1023 = shalt.err (!%p1020_p5)
}
  0xde   : > { %768 = dma.vmem_to_hbm [thread:$0]  (%p1506_p6), %s1405_s11, 64, %s1403_s14, %s533_s17  }
  0xdf PF: > { %s573_s15 = sand.u32 1, %s1074_s18   ;;  %p1507_p7 = scmp.ne.s32.totalorder %s1491_s27, 0 }
  0xe0   : > { %p1508_p13 = scmp.ge.s32.totalorder %s1094_s23, 2  ;;  %s574_s28 = scalar_lea.sflag [#allocation4], %s573_s15 }
  0xe2   : > { %p786_p8 = pnand %p1508_p13, %p1507_p7 }
  0xe4   : > { %1065 = dma.done.wait (!%p786_p8), %s574_s28, 64  }
  0xe5   : > { %1067 = vsyncadd (!%p786_p8), %s574_s28, 4294967232  ;;  %s583_s16 = scalar_lea.sflag [#allocation12], %s573_s15 }
  0xe6   : > { %1069 = dma.done.wait (!%p786_p8), %s583_s16, 64  }
  0xe7   : > { %1071 = vsyncadd (!%p786_p8), %s583_s16, 4294967232  ;;  %s29_s23 = sadd.s32 1, %s1094_s23   ;;  %s1509_s21 = sld [smem:[#allocation19_spill]] }
  0xe8   : > { %p26_p11 = scmp.ge.s32.totalorder %s29_s23, 4   ;;  %s1510_s22 = sld [smem:[#allocation20_spill]] }
  0xe9   : > { %s1511_s18 = smov %s1078_s19  ;;  %s1512_s19 = smov %s1082_s20 }
  0xea   : > { %s1513_s20 = smov %s1276_s25  ;;  %28 = sbr.rel (!%p26_p11) target bundleno = 14 (0xe), region = 125 }
  0xf1   :  { %588 = vsyncpa [#allocation3], 1 }
  0xf2   :  { %590 = vsyncpa [#allocation3 + $0x1], 1 }
  0xf3   :  { %591 = vsyncpa [#allocation6], 1 }
  0xf4   :  { %593 = vsyncpa [#allocation6 + $0x1], 1 }
  0xf5   :  { %594 = vsyncpa [#allocation9], 1 }
  0xf6   :  { %595 = vsyncpa [#allocation4], 1 }
  0xf7   :  { %597 = vsyncpa [#allocation4 + $0x1], 1 }
  0xf8   :  { %598 = vsyncpa [#allocation12], 1 }
  0xf9   :  { %600 = vsyncpa [#allocation12 + $0x1], 1 }

</bundles_post_ra>
